<compile_context>
chip_gen: v7x
topology: tpu7x:2x2x1
jax: 0.10.0
libtpu: 0.0.40
codegen_flags: <defaults>
</compile_context>

<pallas_src>
import jax
import jax.numpy as jnp
from jax.experimental import pallas as pl
from jax.experimental.pallas import tpu as pltpu

_LANE = 128
_BLOCK_BYTES = 2 * 1024 * 1024      # ~2 MiB per input block on the grid path


def _add_kernel(a_ref, b_ref, o_ref):
    # Whole-tile elementwise add on the VPU.
    o_ref[...] = a_ref[...] + b_ref[...]


def _as_2d(x):
    """Free (contiguous) 2D view of x -- no pads, no copies."""
    total = x.size
    if total % _LANE == 0:
        # Lane-dense view: every store is a full unmasked 128-lane vst.
        return x.reshape(total // _LANE, _LANE)
    if x.ndim >= 2:
        # Merge trailing dims, e.g. (1,672,7,7) -> (672,49); keeps the lane
        # dim as large as a free reshape allows.
        cols = x.shape[-1] * x.shape[-2]
        return x.reshape(-1, cols)
    return x.reshape(1, total)


def pallas_add(a, b):
    assert a.shape == b.shape and a.dtype == b.dtype
    orig_shape = a.shape

    a2 = _as_2d(a)
    b2 = _as_2d(b)
    rows, cols = a2.shape
    itemsize = jnp.dtype(a2.dtype).itemsize

    # Rows per grid block targeting ~2 MiB per input block; keep it a multiple
    # of 8 so the (sublane, lane) block constraint is satisfied (the lane dim
    # of each block is always the full array extent `cols`).
    block_rows = max(8, (_BLOCK_BYTES // (cols * itemsize)) // 8 * 8)

    if rows <= block_rows:
        # Small case: whole arrays live in VMEM for a single kernel body;
        # no grid, no pipelining machinery, no padding.
        out2 = pl.pallas_call(
            _add_kernel,
            out_shape=jax.ShapeDtypeStruct((rows, cols), a2.dtype),
            in_specs=[
                pl.BlockSpec(memory_space=pltpu.MemorySpace.VMEM),
                pl.BlockSpec(memory_space=pltpu.MemorySpace.VMEM),
            ],
            out_specs=pl.BlockSpec(memory_space=pltpu.MemorySpace.VMEM),
        )(a2, b2)
    else:
        # Large case: 1-D grid over row tiles.  cdiv grid -> Pallas masks the
        # ragged final block; BlockSpec double-buffering overlaps DMA with the
        # VPU add.
        n_blocks = pl.cdiv(rows, block_rows)
        out2 = pl.pallas_call(
            _add_kernel,
            out_shape=jax.ShapeDtypeStruct((rows, cols), a2.dtype),
            grid=(n_blocks,),
            in_specs=[
                pl.BlockSpec((block_rows, cols), lambda i: (i, 0)),
                pl.BlockSpec((block_rows, cols), lambda i: (i, 0)),
            ],
            out_specs=pl.BlockSpec((block_rows, cols), lambda i: (i, 0)),
            compiler_params=pltpu.CompilerParams(
                dimension_semantics=("parallel",)),
        )(a2, b2)

    return out2.reshape(orig_shape)


if __name__ == "__main__":
    key = jax.random.PRNGKey(0)
    k1, k2 = jax.random.split(key)

    # Shape implied by the module's forward: [1, 672, 7, 7]
    # (small / gridless path with a (672, 49) whole-array view).
    shape = (1, 672, 7, 7)
    x121 = jax.random.normal(k1, shape, dtype=jnp.float32)
    x129 = jax.random.normal(k2, shape, dtype=jnp.float32)
    out = jax.block_until_ready(pallas_add(x121, x129))
    assert out.shape == shape
    assert jnp.allclose(out, x121 + x129, atol=1e-6, rtol=1e-6)

    # Also exercise the tiled / pipelined grid path (lane-dense rows with a
    # ragged final block: 12800 rows -> 3 full 4096-row blocks + 512 rows).
    big_shape = (1, 100, 128, 128)
    y1 = jax.random.normal(k1, big_shape, dtype=jnp.float32)
    y2 = jax.random.normal(k2, big_shape, dtype=jnp.float32)
    out_big = jax.block_until_ready(pallas_add(y1, y2))
    assert out_big.shape == big_shape
    assert jnp.allclose(out_big, y1 + y2, atol=1e-6, rtol=1e-6)

    print("KERNEL_OK")
</pallas_src>

<mosaic_0001>
module attributes {stable_mosaic.version = 11 : i64} {
  func.func @_add_kernel(%arg0: memref<672x49xf32, #tpu.memory_space<vmem>>, %arg1: memref<672x49xf32, #tpu.memory_space<vmem>>, %arg2: memref<672x49xf32, #tpu.memory_space<vmem>>) attributes {dimension_semantics = [], scalar_prefetch = 0 : i64, scratch_operands = 0 : i64, tpu.core_type = #tpu.core_type<tc>} {
    %c0 = arith.constant 0 : index
    %c0_0 = arith.constant 0 : index
    %0 = vector.load %arg0[%c0, %c0_0] : memref<672x49xf32, #tpu.memory_space<vmem>>, vector<672x49xf32>
    %c0_1 = arith.constant 0 : index
    %c0_2 = arith.constant 0 : index
    %1 = vector.load %arg1[%c0_1, %c0_2] : memref<672x49xf32, #tpu.memory_space<vmem>>, vector<672x49xf32>
    %2 = arith.addf %0, %1 : vector<672x49xf32>
    %c0_3 = arith.constant 0 : index
    %c0_4 = arith.constant 0 : index
    %3 = vector.load %arg2[%c0_3, %c0_4] : memref<672x49xf32, #tpu.memory_space<vmem>>, vector<672x49xf32>
    tpu.vector_store %arg2[%c0_3, %c0_4], %2 {strides = array<i32>} : memref<672x49xf32, #tpu.memory_space<vmem>>, vector<672x49xf32>,
    return
  }
}

</mosaic_0001>

<bundles_post_ra>
// kernel: tpu_custom_call.1
= control target key start
LH: loop header
LB: loop body
LE: loop exit
PB: predicated region body
PF: predicated region fallthrough
CT: control target
= control target key end

     0   :  { %vm263_vm0 = vcmask 400384   ;;  %s1207_s0 = inlined_call_operand.vmem [shape: f32[672,49], index: 0, kind: input, shape index: {}]   ;;  %s1208_s1 = inlined_call_operand.vmem [shape: f32[672,49], index: 1, kind: input, shape index: {}]   ;;  %s1209_s2 = inlined_call_operand.vmem [shape: f32[672,49], index: 2, kind: output, shape index: {}]  }
   0x1   :  { %v11_v0 = vld [vmem:[%s1207_s0] sm:$0xff]  ;;  %v12_v2 = vld [vmem:[%s1207_s0 + $0x8] sm:$0xff]  ;;  %v13_v5 = vld [vmem:[%s1207_s0 + $0x10] sm:$0xff] }
   0x2   :  { %v95_v1 = vld [vmem:[%s1208_s1] sm:$0xff]  ;;  %v96_v4 = vld [vmem:[%s1208_s1 + $0x8] sm:$0xff]  ;;  %v97_v6 = vld [vmem:[%s1208_s1 + $0x10] sm:$0xff] }
   0x3   :  { %v179_v3 = vadd.f32 %v95_v1, %v11_v0  ;;  %v180_v7 = vadd.f32 %v96_v4, %v12_v2  ;;  %v181_v8 = vadd.f32 %v97_v6, %v13_v5  ;;  %v14_v9 = vld [vmem:[%s1207_s0 + $0x18] sm:$0xff]  ;;  %v15_v11 = vld [vmem:[%s1207_s0 + $0x20] sm:$0xff]  ;;  %v16_v14 = vld [vmem:[%s1207_s0 + $0x28] sm:$0xff] }
   0x4   :  { %v98_v10 = vld [vmem:[%s1208_s1 + $0x18] sm:$0xff]  ;;  %v99_v13 = vld [vmem:[%s1208_s1 + $0x20] sm:$0xff]  ;;  %v100_v15 = vld [vmem:[%s1208_s1 + $0x28] sm:$0xff] }
   0x5   :  { %264 = vst.msk [vmem:[%s1209_s2] sm:$0xff] %vm263_vm0, %v179_v3  ;;  %v182_v12 = vadd.f32 %v98_v10, %v14_v9  ;;  %265 = vst.msk [vmem:[%s1209_s2 + $0x8] sm:$0xff] %vm263_vm0, %v180_v7  ;;  %v183_v16 = vadd.f32 %v99_v13, %v15_v11  ;;  %v184_v17 = vadd.f32 %v100_v15, %v16_v14  ;;  %v17_v18 = vld [vmem:[%s1207_s0 + $0x30] sm:$0xff]  ;;  %v18_v20 = vld [vmem:[%s1207_s0 + $0x38] sm:$0xff] }
   0x6   :  { %266 = vst.msk [vmem:[%s1209_s2 + $0x10] sm:$0xff] %vm263_vm0, %v181_v8  ;;  %v101_v19 = vld [vmem:[%s1208_s1 + $0x30] sm:$0xff]  ;;  %v102_v22 = vld [vmem:[%s1208_s1 + $0x38] sm:$0xff]  ;;  %v19_v23 = vld [vmem:[%s1207_s0 + $0x40] sm:$0xff] }
   0x7   :  { %267 = vst.msk [vmem:[%s1209_s2 + $0x18] sm:$0xff] %vm263_vm0, %v182_v12  ;;  %v185_v21 = vadd.f32 %v101_v19, %v17_v18  ;;  %v103_v24 = vld [vmem:[%s1208_s1 + $0x40] sm:$0xff]  ;;  %268 = vst.msk [vmem:[%s1209_s2 + $0x20] sm:$0xff] %vm263_vm0, %v183_v16  ;;  %v186_v25 = vadd.f32 %v102_v22, %v18_v20  ;;  %v20_v27 = vld [vmem:[%s1207_s0 + $0x48] sm:$0xff] }
   0x8   :  { %269 = vst.msk [vmem:[%s1209_s2 + $0x28] sm:$0xff] %vm263_vm0, %v184_v17  ;;  %v187_v26 = vadd.f32 %v103_v24, %v19_v23  ;;  %v104_v28 = vld [vmem:[%s1208_s1 + $0x48] sm:$0xff]  ;;  %v21_v29 = vld [vmem:[%s1207_s0 + $0x50] sm:$0xff]  ;;  %v22_v32 = vld [vmem:[%s1207_s0 + $0x58] sm:$0xff] }
   0x9   :  { %270 = vst.msk [vmem:[%s1209_s2 + $0x30] sm:$0xff] %vm263_vm0, %v185_v21  ;;  %v188_v30 = vadd.f32 %v104_v28, %v20_v27  ;;  %v105_v31 = vld [vmem:[%s1208_s1 + $0x50] sm:$0xff]  ;;  %v106_v33 = vld [vmem:[%s1208_s1 + $0x58] sm:$0xff]  ;;  %271 = vst.msk [vmem:[%s1209_s2 + $0x38] sm:$0xff] %vm263_vm0, %v186_v25 }
   0xa   :  { %272 = vst.msk [vmem:[%s1209_s2 + $0x40] sm:$0xff] %vm263_vm0, %v187_v26  ;;  %v189_v34 = vadd.f32 %v105_v31, %v21_v29  ;;  %v190_v35 = vadd.f32 %v106_v33, %v22_v32  ;;  %v23_v36 = vld [vmem:[%s1207_s0 + $0x60] sm:$0xff]  ;;  %v24_v38 = vld [vmem:[%s1207_s0 + $0x68] sm:$0xff]  ;;  %v25_v41 = vld [vmem:[%s1207_s0 + $0x70] sm:$0xff] }
   0xb   :  { %v107_v37 = vld [vmem:[%s1208_s1 + $0x60] sm:$0xff]  ;;  %273 = vst.msk [vmem:[%s1209_s2 + $0x48] sm:$0xff] %vm263_vm0, %v188_v30  ;;  %v108_v40 = vld [vmem:[%s1208_s1 + $0x68] sm:$0xff]  ;;  %v109_v42 = vld [vmem:[%s1208_s1 + $0x70] sm:$0xff] }
   0xc   :  { %v191_v39 = vadd.f32 %v107_v37, %v23_v36  ;;  %274 = vst.msk [vmem:[%s1209_s2 + $0x50] sm:$0xff] %vm263_vm0, %v189_v34  ;;  %275 = vst.msk [vmem:[%s1209_s2 + $0x58] sm:$0xff] %vm263_vm0, %v190_v35  ;;  %v192_v43 = vadd.f32 %v108_v40, %v24_v38  ;;  %v193_v44 = vadd.f32 %v109_v42, %v25_v41  ;;  %v26_v45 = vld [vmem:[%s1207_s0 + $0x78] sm:$0xff]  ;;  %v27_v47 = vld [vmem:[%s1207_s0 + $0x80] sm:$0xff] }
   0xd   :  { %v110_v46 = vld [vmem:[%s1208_s1 + $0x78] sm:$0xff]  ;;  %v111_v49 = vld [vmem:[%s1208_s1 + $0x80] sm:$0xff]  ;;  %v28_v50 = vld [vmem:[%s1207_s0 + $0x88] sm:$0xff] }
   0xe   :  { %276 = vst.msk [vmem:[%s1209_s2 + $0x60] sm:$0xff] %vm263_vm0, %v191_v39  ;;  %v194_v48 = vadd.f32 %v110_v46, %v26_v45  ;;  %v112_v51 = vld [vmem:[%s1208_s1 + $0x88] sm:$0xff]  ;;  %277 = vst.msk [vmem:[%s1209_s2 + $0x68] sm:$0xff] %vm263_vm0, %v192_v43  ;;  %v195_v52 = vadd.f32 %v111_v49, %v27_v47  ;;  %v29_v54 = vld [vmem:[%s1207_s0 + $0x90] sm:$0xff] }
   0xf   :  { %278 = vst.msk [vmem:[%s1209_s2 + $0x70] sm:$0xff] %vm263_vm0, %v193_v44  ;;  %v196_v53 = vadd.f32 %v112_v51, %v28_v50  ;;  %v113_v55 = vld [vmem:[%s1208_s1 + $0x90] sm:$0xff]  ;;  %v30_v56 = vld [vmem:[%s1207_s0 + $0x98] sm:$0xff]  ;;  %v31_v59 = vld [vmem:[%s1207_s0 + $0xa0] sm:$0xff] }
  0x10   :  { %279 = vst.msk [vmem:[%s1209_s2 + $0x78] sm:$0xff] %vm263_vm0, %v194_v48  ;;  %v197_v57 = vadd.f32 %v113_v55, %v29_v54  ;;  %v114_v58 = vld [vmem:[%s1208_s1 + $0x98] sm:$0xff]  ;;  %v115_v60 = vld [vmem:[%s1208_s1 + $0xa0] sm:$0xff]  ;;  %280 = vst.msk [vmem:[%s1209_s2 + $0x80] sm:$0xff] %vm263_vm0, %v195_v52 }
  0x11   :  { %281 = vst.msk [vmem:[%s1209_s2 + $0x88] sm:$0xff] %vm263_vm0, %v196_v53  ;;  %v198_v61 = vadd.f32 %v114_v58, %v30_v56  ;;  %v199_v62 = vadd.f32 %v115_v60, %v31_v59  ;;  %v32_v63 = vld [vmem:[%s1207_s0 + $0xa8] sm:$0xff]  ;;  %v33_v1 = vld [vmem:[%s1207_s0 + $0xb0] sm:$0xff]  ;;  %v34_v4 = vld [vmem:[%s1207_s0 + $0xb8] sm:$0xff] }
  0x12   :  { %v116_v0 = vld [vmem:[%s1208_s1 + $0xa8] sm:$0xff]  ;;  %282 = vst.msk [vmem:[%s1209_s2 + $0x90] sm:$0xff] %vm263_vm0, %v197_v57  ;;  %v117_v3 = vld [vmem:[%s1208_s1 + $0xb0] sm:$0xff]  ;;  %v118_v5 = vld [vmem:[%s1208_s1 + $0xb8] sm:$0xff] }
  0x13   :  { %v200_v2 = vadd.f32 %v116_v0, %v32_v63  ;;  %283 = vst.msk [vmem:[%s1209_s2 + $0x98] sm:$0xff] %vm263_vm0, %v198_v61  ;;  %284 = vst.msk [vmem:[%s1209_s2 + $0xa0] sm:$0xff] %vm263_vm0, %v199_v62  ;;  %v201_v6 = vadd.f32 %v117_v3, %v33_v1  ;;  %v202_v7 = vadd.f32 %v118_v5, %v34_v4  ;;  %v35_v8 = vld [vmem:[%s1207_s0 + $0xc0] sm:$0xff]  ;;  %v36_v10 = vld [vmem:[%s1207_s0 + $0xc8] sm:$0xff] }
  0x14   :  { %v119_v9 = vld [vmem:[%s1208_s1 + $0xc0] sm:$0xff]  ;;  %v120_v12 = vld [vmem:[%s1208_s1 + $0xc8] sm:$0xff]  ;;  %v37_v13 = vld [vmem:[%s1207_s0 + $0xd0] sm:$0xff] }
  0x15   :  { %285 = vst.msk [vmem:[%s1209_s2 + $0xa8] sm:$0xff] %vm263_vm0, %v200_v2  ;;  %v203_v11 = vadd.f32 %v119_v9, %v35_v8  ;;  %v121_v14 = vld [vmem:[%s1208_s1 + $0xd0] sm:$0xff]  ;;  %286 = vst.msk [vmem:[%s1209_s2 + $0xb0] sm:$0xff] %vm263_vm0, %v201_v6  ;;  %v204_v15 = vadd.f32 %v120_v12, %v36_v10  ;;  %v38_v17 = vld [vmem:[%s1207_s0 + $0xd8] sm:$0xff] }
  0x16   :  { %287 = vst.msk [vmem:[%s1209_s2 + $0xb8] sm:$0xff] %vm263_vm0, %v202_v7  ;;  %v205_v16 = vadd.f32 %v121_v14, %v37_v13  ;;  %v122_v18 = vld [vmem:[%s1208_s1 + $0xd8] sm:$0xff]  ;;  %v39_v19 = vld [vmem:[%s1207_s0 + $0xe0] sm:$0xff]  ;;  %v40_v22 = vld [vmem:[%s1207_s0 + $0xe8] sm:$0xff] }
  0x17   :  { %288 = vst.msk [vmem:[%s1209_s2 + $0xc0] sm:$0xff] %vm263_vm0, %v203_v11  ;;  %v206_v20 = vadd.f32 %v122_v18, %v38_v17  ;;  %v123_v21 = vld [vmem:[%s1208_s1 + $0xe0] sm:$0xff]  ;;  %v124_v23 = vld [vmem:[%s1208_s1 + $0xe8] sm:$0xff]  ;;  %289 = vst.msk [vmem:[%s1209_s2 + $0xc8] sm:$0xff] %vm263_vm0, %v204_v15 }
  0x18   :  { %290 = vst.msk [vmem:[%s1209_s2 + $0xd0] sm:$0xff] %vm263_vm0, %v205_v16  ;;  %v207_v24 = vadd.f32 %v123_v21, %v39_v19  ;;  %v208_v25 = vadd.f32 %v124_v23, %v40_v22  ;;  %v41_v26 = vld [vmem:[%s1207_s0 + $0xf0] sm:$0xff]  ;;  %v42_v28 = vld [vmem:[%s1207_s0 + $0xf8] sm:$0xff]  ;;  %v43_v31 = vld [vmem:[%s1207_s0 + $0x100] sm:$0xff] }
  0x19   :  { %v125_v27 = vld [vmem:[%s1208_s1 + $0xf0] sm:$0xff]  ;;  %291 = vst.msk [vmem:[%s1209_s2 + $0xd8] sm:$0xff] %vm263_vm0, %v206_v20  ;;  %v126_v30 = vld [vmem:[%s1208_s1 + $0xf8] sm:$0xff]  ;;  %v127_v32 = vld [vmem:[%s1208_s1 + $0x100] sm:$0xff] }
  0x1a   :  { %v209_v29 = vadd.f32 %v125_v27, %v41_v26  ;;  %292 = vst.msk [vmem:[%s1209_s2 + $0xe0] sm:$0xff] %vm263_vm0, %v207_v24  ;;  %293 = vst.msk [vmem:[%s1209_s2 + $0xe8] sm:$0xff] %vm263_vm0, %v208_v25  ;;  %v210_v33 = vadd.f32 %v126_v30, %v42_v28  ;;  %v211_v34 = vadd.f32 %v127_v32, %v43_v31  ;;  %v44_v35 = vld [vmem:[%s1207_s0 + $0x108] sm:$0xff]  ;;  %v45_v37 = vld [vmem:[%s1207_s0 + $0x110] sm:$0xff] }
  0x1b   :  { %v128_v36 = vld [vmem:[%s1208_s1 + $0x108] sm:$0xff]  ;;  %v129_v39 = vld [vmem:[%s1208_s1 + $0x110] sm:$0xff]  ;;  %v46_v40 = vld [vmem:[%s1207_s0 + $0x118] sm:$0xff] }
  0x1c   :  { %294 = vst.msk [vmem:[%s1209_s2 + $0xf0] sm:$0xff] %vm263_vm0, %v209_v29  ;;  %v212_v38 = vadd.f32 %v128_v36, %v44_v35  ;;  %v130_v41 = vld [vmem:[%s1208_s1 + $0x118] sm:$0xff]  ;;  %295 = vst.msk [vmem:[%s1209_s2 + $0xf8] sm:$0xff] %vm263_vm0, %v210_v33  ;;  %v213_v42 = vadd.f32 %v129_v39, %v45_v37  ;;  %v47_v44 = vld [vmem:[%s1207_s0 + $0x120] sm:$0xff] }
  0x1d   :  { %296 = vst.msk [vmem:[%s1209_s2 + $0x100] sm:$0xff] %vm263_vm0, %v211_v34  ;;  %v214_v43 = vadd.f32 %v130_v41, %v46_v40  ;;  %v131_v45 = vld [vmem:[%s1208_s1 + $0x120] sm:$0xff]  ;;  %v48_v46 = vld [vmem:[%s1207_s0 + $0x128] sm:$0xff]  ;;  %v49_v49 = vld [vmem:[%s1207_s0 + $0x130] sm:$0xff] }
  0x1e   :  { %297 = vst.msk [vmem:[%s1209_s2 + $0x108] sm:$0xff] %vm263_vm0, %v212_v38  ;;  %v215_v47 = vadd.f32 %v131_v45, %v47_v44  ;;  %v132_v48 = vld [vmem:[%s1208_s1 + $0x128] sm:$0xff]  ;;  %v133_v50 = vld [vmem:[%s1208_s1 + $0x130] sm:$0xff]  ;;  %298 = vst.msk [vmem:[%s1209_s2 + $0x110] sm:$0xff] %vm263_vm0, %v213_v42 }
  0x1f   :  { %299 = vst.msk [vmem:[%s1209_s2 + $0x118] sm:$0xff] %vm263_vm0, %v214_v43  ;;  %v216_v51 = vadd.f32 %v132_v48, %v48_v46  ;;  %v217_v52 = vadd.f32 %v133_v50, %v49_v49  ;;  %v50_v53 = vld [vmem:[%s1207_s0 + $0x138] sm:$0xff]  ;;  %v51_v55 = vld [vmem:[%s1207_s0 + $0x140] sm:$0xff]  ;;  %v52_v58 = vld [vmem:[%s1207_s0 + $0x148] sm:$0xff] }
  0x20   :  { %v134_v54 = vld [vmem:[%s1208_s1 + $0x138] sm:$0xff]  ;;  %300 = vst.msk [vmem:[%s1209_s2 + $0x120] sm:$0xff] %vm263_vm0, %v215_v47  ;;  %v135_v57 = vld [vmem:[%s1208_s1 + $0x140] sm:$0xff]  ;;  %v136_v59 = vld [vmem:[%s1208_s1 + $0x148] sm:$0xff] }
  0x21   :  { %v218_v56 = vadd.f32 %v134_v54, %v50_v53  ;;  %301 = vst.msk [vmem:[%s1209_s2 + $0x128] sm:$0xff] %vm263_vm0, %v216_v51  ;;  %302 = vst.msk [vmem:[%s1209_s2 + $0x130] sm:$0xff] %vm263_vm0, %v217_v52  ;;  %v219_v60 = vadd.f32 %v135_v57, %v51_v55  ;;  %v220_v61 = vadd.f32 %v136_v59, %v52_v58  ;;  %v53_v62 = vld [vmem:[%s1207_s0 + $0x150] sm:$0xff]  ;;  %v54_v0 = vld [vmem:[%s1207_s0 + $0x158] sm:$0xff] }
  0x22   :  { %v137_v63 = vld [vmem:[%s1208_s1 + $0x150] sm:$0xff]  ;;  %v138_v2 = vld [vmem:[%s1208_s1 + $0x158] sm:$0xff]  ;;  %v55_v3 = vld [vmem:[%s1207_s0 + $0x160] sm:$0xff] }
  0x23   :  { %303 = vst.msk [vmem:[%s1209_s2 + $0x138] sm:$0xff] %vm263_vm0, %v218_v56  ;;  %v221_v1 = vadd.f32 %v137_v63, %v53_v62  ;;  %v139_v4 = vld [vmem:[%s1208_s1 + $0x160] sm:$0xff]  ;;  %304 = vst.msk [vmem:[%s1209_s2 + $0x140] sm:$0xff] %vm263_vm0, %v219_v60  ;;  %v222_v5 = vadd.f32 %v138_v2, %v54_v0  ;;  %v56_v7 = vld [vmem:[%s1207_s0 + $0x168] sm:$0xff] }
  0x24   :  { %305 = vst.msk [vmem:[%s1209_s2 + $0x148] sm:$0xff] %vm263_vm0, %v220_v61  ;;  %v223_v6 = vadd.f32 %v139_v4, %v55_v3  ;;  %v140_v8 = vld [vmem:[%s1208_s1 + $0x168] sm:$0xff]  ;;  %v57_v9 = vld [vmem:[%s1207_s0 + $0x170] sm:$0xff]  ;;  %v58_v12 = vld [vmem:[%s1207_s0 + $0x178] sm:$0xff] }
  0x25   :  { %306 = vst.msk [vmem:[%s1209_s2 + $0x150] sm:$0xff] %vm263_vm0, %v221_v1  ;;  %v224_v10 = vadd.f32 %v140_v8, %v56_v7  ;;  %v141_v11 = vld [vmem:[%s1208_s1 + $0x170] sm:$0xff]  ;;  %v142_v13 = vld [vmem:[%s1208_s1 + $0x178] sm:$0xff]  ;;  %307 = vst.msk [vmem:[%s1209_s2 + $0x158] sm:$0xff] %vm263_vm0, %v222_v5 }
  0x26   :  { %308 = vst.msk [vmem:[%s1209_s2 + $0x160] sm:$0xff] %vm263_vm0, %v223_v6  ;;  %v225_v14 = vadd.f32 %v141_v11, %v57_v9  ;;  %v226_v15 = vadd.f32 %v142_v13, %v58_v12  ;;  %v59_v16 = vld [vmem:[%s1207_s0 + $0x180] sm:$0xff]  ;;  %v60_v18 = vld [vmem:[%s1207_s0 + $0x188] sm:$0xff]  ;;  %v61_v21 = vld [vmem:[%s1207_s0 + $0x190] sm:$0xff] }
  0x27   :  { %v143_v17 = vld [vmem:[%s1208_s1 + $0x180] sm:$0xff]  ;;  %309 = vst.msk [vmem:[%s1209_s2 + $0x168] sm:$0xff] %vm263_vm0, %v224_v10  ;;  %v144_v20 = vld [vmem:[%s1208_s1 + $0x188] sm:$0xff]  ;;  %v145_v22 = vld [vmem:[%s1208_s1 + $0x190] sm:$0xff] }
  0x28   :  { %v227_v19 = vadd.f32 %v143_v17, %v59_v16  ;;  %310 = vst.msk [vmem:[%s1209_s2 + $0x170] sm:$0xff] %vm263_vm0, %v225_v14  ;;  %311 = vst.msk [vmem:[%s1209_s2 + $0x178] sm:$0xff] %vm263_vm0, %v226_v15  ;;  %v228_v23 = vadd.f32 %v144_v20, %v60_v18  ;;  %v229_v24 = vadd.f32 %v145_v22, %v61_v21  ;;  %v62_v25 = vld [vmem:[%s1207_s0 + $0x198] sm:$0xff]  ;;  %v63_v27 = vld [vmem:[%s1207_s0 + $0x1a0] sm:$0xff] }
  0x29   :  { %v146_v26 = vld [vmem:[%s1208_s1 + $0x198] sm:$0xff]  ;;  %v147_v29 = vld [vmem:[%s1208_s1 + $0x1a0] sm:$0xff]  ;;  %v64_v30 = vld [vmem:[%s1207_s0 + $0x1a8] sm:$0xff] }
  0x2a   :  { %312 = vst.msk [vmem:[%s1209_s2 + $0x180] sm:$0xff] %vm263_vm0, %v227_v19  ;;  %v230_v28 = vadd.f32 %v146_v26, %v62_v25  ;;  %v148_v31 = vld [vmem:[%s1208_s1 + $0x1a8] sm:$0xff]  ;;  %313 = vst.msk [vmem:[%s1209_s2 + $0x188] sm:$0xff] %vm263_vm0, %v228_v23  ;;  %v231_v32 = vadd.f32 %v147_v29, %v63_v27  ;;  %v65_v34 = vld [vmem:[%s1207_s0 + $0x1b0] sm:$0xff] }
  0x2b   :  { %314 = vst.msk [vmem:[%s1209_s2 + $0x190] sm:$0xff] %vm263_vm0, %v229_v24  ;;  %v232_v33 = vadd.f32 %v148_v31, %v64_v30  ;;  %v149_v35 = vld [vmem:[%s1208_s1 + $0x1b0] sm:$0xff]  ;;  %v66_v36 = vld [vmem:[%s1207_s0 + $0x1b8] sm:$0xff]  ;;  %v67_v39 = vld [vmem:[%s1207_s0 + $0x1c0] sm:$0xff] }
  0x2c   :  { %315 = vst.msk [vmem:[%s1209_s2 + $0x198] sm:$0xff] %vm263_vm0, %v230_v28  ;;  %v233_v37 = vadd.f32 %v149_v35, %v65_v34  ;;  %v150_v38 = vld [vmem:[%s1208_s1 + $0x1b8] sm:$0xff]  ;;  %v151_v40 = vld [vmem:[%s1208_s1 + $0x1c0] sm:$0xff]  ;;  %316 = vst.msk [vmem:[%s1209_s2 + $0x1a0] sm:$0xff] %vm263_vm0, %v231_v32 }
  0x2d   :  { %317 = vst.msk [vmem:[%s1209_s2 + $0x1a8] sm:$0xff] %vm263_vm0, %v232_v33  ;;  %v234_v41 = vadd.f32 %v150_v38, %v66_v36  ;;  %v235_v42 = vadd.f32 %v151_v40, %v67_v39  ;;  %v68_v43 = vld [vmem:[%s1207_s0 + $0x1c8] sm:$0xff]  ;;  %v69_v45 = vld [vmem:[%s1207_s0 + $0x1d0] sm:$0xff]  ;;  %v70_v48 = vld [vmem:[%s1207_s0 + $0x1d8] sm:$0xff] }
  0x2e   :  { %v152_v44 = vld [vmem:[%s1208_s1 + $0x1c8] sm:$0xff]  ;;  %318 = vst.msk [vmem:[%s1209_s2 + $0x1b0] sm:$0xff] %vm263_vm0, %v233_v37  ;;  %v153_v47 = vld [vmem:[%s1208_s1 + $0x1d0] sm:$0xff]  ;;  %v154_v49 = vld [vmem:[%s1208_s1 + $0x1d8] sm:$0xff] }
  0x2f   :  { %v236_v46 = vadd.f32 %v152_v44, %v68_v43  ;;  %319 = vst.msk [vmem:[%s1209_s2 + $0x1b8] sm:$0xff] %vm263_vm0, %v234_v41  ;;  %320 = vst.msk [vmem:[%s1209_s2 + $0x1c0] sm:$0xff] %vm263_vm0, %v235_v42  ;;  %v237_v50 = vadd.f32 %v153_v47, %v69_v45  ;;  %v238_v51 = vadd.f32 %v154_v49, %v70_v48  ;;  %v71_v52 = vld [vmem:[%s1207_s0 + $0x1e0] sm:$0xff]  ;;  %v72_v54 = vld [vmem:[%s1207_s0 + $0x1e8] sm:$0xff] }
  0x30   :  { %v155_v53 = vld [vmem:[%s1208_s1 + $0x1e0] sm:$0xff]  ;;  %v156_v56 = vld [vmem:[%s1208_s1 + $0x1e8] sm:$0xff]  ;;  %v73_v57 = vld [vmem:[%s1207_s0 + $0x1f0] sm:$0xff] }
  0x31   :  { %321 = vst.msk [vmem:[%s1209_s2 + $0x1c8] sm:$0xff] %vm263_vm0, %v236_v46  ;;  %v239_v55 = vadd.f32 %v155_v53, %v71_v52  ;;  %v157_v58 = vld [vmem:[%s1208_s1 + $0x1f0] sm:$0xff]  ;;  %322 = vst.msk [vmem:[%s1209_s2 + $0x1d0] sm:$0xff] %vm263_vm0, %v237_v50  ;;  %v240_v59 = vadd.f32 %v156_v56, %v72_v54  ;;  %v74_v61 = vld [vmem:[%s1207_s0 + $0x1f8] sm:$0xff] }
  0x32   :  { %323 = vst.msk [vmem:[%s1209_s2 + $0x1d8] sm:$0xff] %vm263_vm0, %v238_v51  ;;  %v241_v60 = vadd.f32 %v157_v58, %v73_v57  ;;  %v158_v62 = vld [vmem:[%s1208_s1 + $0x1f8] sm:$0xff]  ;;  %v75_v63 = vld [vmem:[%s1207_s0 + $0x200] sm:$0xff]  ;;  %v76_v2 = vld [vmem:[%s1207_s0 + $0x208] sm:$0xff] }
  0x33   :  { %324 = vst.msk [vmem:[%s1209_s2 + $0x1e0] sm:$0xff] %vm263_vm0, %v239_v55  ;;  %v242_v0 = vadd.f32 %v158_v62, %v74_v61  ;;  %v159_v1 = vld [vmem:[%s1208_s1 + $0x200] sm:$0xff]  ;;  %v160_v3 = vld [vmem:[%s1208_s1 + $0x208] sm:$0xff]  ;;  %325 = vst.msk [vmem:[%s1209_s2 + $0x1e8] sm:$0xff] %vm263_vm0, %v240_v59 }
  0x34   :  { %326 = vst.msk [vmem:[%s1209_s2 + $0x1f0] sm:$0xff] %vm263_vm0, %v241_v60  ;;  %v243_v4 = vadd.f32 %v159_v1, %v75_v63  ;;  %v244_v5 = vadd.f32 %v160_v3, %v76_v2  ;;  %v77_v6 = vld [vmem:[%s1207_s0 + $0x210] sm:$0xff]  ;;  %v78_v8 = vld [vmem:[%s1207_s0 + $0x218] sm:$0xff]  ;;  %v79_v11 = vld [vmem:[%s1207_s0 + $0x220] sm:$0xff] }
  0x35   :  { %v161_v7 = vld [vmem:[%s1208_s1 + $0x210] sm:$0xff]  ;;  %327 = vst.msk [vmem:[%s1209_s2 + $0x1f8] sm:$0xff] %vm263_vm0, %v242_v0  ;;  %v162_v10 = vld [vmem:[%s1208_s1 + $0x218] sm:$0xff]  ;;  %v163_v12 = vld [vmem:[%s1208_s1 + $0x220] sm:$0xff] }
  0x36   :  { %v245_v9 = vadd.f32 %v161_v7, %v77_v6  ;;  %328 = vst.msk [vmem:[%s1209_s2 + $0x200] sm:$0xff] %vm263_vm0, %v243_v4  ;;  %329 = vst.msk [vmem:[%s1209_s2 + $0x208] sm:$0xff] %vm263_vm0, %v244_v5  ;;  %v246_v13 = vadd.f32 %v162_v10, %v78_v8  ;;  %v247_v14 = vadd.f32 %v163_v12, %v79_v11  ;;  %v80_v15 = vld [vmem:[%s1207_s0 + $0x228] sm:$0xff]  ;;  %v81_v17 = vld [vmem:[%s1207_s0 + $0x230] sm:$0xff] }
  0x37   :  { %v164_v16 = vld [vmem:[%s1208_s1 + $0x228] sm:$0xff]  ;;  %v165_v19 = vld [vmem:[%s1208_s1 + $0x230] sm:$0xff]  ;;  %v82_v20 = vld [vmem:[%s1207_s0 + $0x238] sm:$0xff] }
  0x38   :  { %330 = vst.msk [vmem:[%s1209_s2 + $0x210] sm:$0xff] %vm263_vm0, %v245_v9  ;;  %v248_v18 = vadd.f32 %v164_v16, %v80_v15  ;;  %v166_v21 = vld [vmem:[%s1208_s1 + $0x238] sm:$0xff]  ;;  %331 = vst.msk [vmem:[%s1209_s2 + $0x218] sm:$0xff] %vm263_vm0, %v246_v13  ;;  %v249_v22 = vadd.f32 %v165_v19, %v81_v17  ;;  %v83_v24 = vld [vmem:[%s1207_s0 + $0x240] sm:$0xff] }
  0x39   :  { %332 = vst.msk [vmem:[%s1209_s2 + $0x220] sm:$0xff] %vm263_vm0, %v247_v14  ;;  %v250_v23 = vadd.f32 %v166_v21, %v82_v20  ;;  %v167_v25 = vld [vmem:[%s1208_s1 + $0x240] sm:$0xff]  ;;  %v84_v26 = vld [vmem:[%s1207_s0 + $0x248] sm:$0xff]  ;;  %v85_v29 = vld [vmem:[%s1207_s0 + $0x250] sm:$0xff] }
  0x3a   :  { %333 = vst.msk [vmem:[%s1209_s2 + $0x228] sm:$0xff] %vm263_vm0, %v248_v18  ;;  %v251_v27 = vadd.f32 %v167_v25, %v83_v24  ;;  %v168_v28 = vld [vmem:[%s1208_s1 + $0x248] sm:$0xff]  ;;  %v169_v30 = vld [vmem:[%s1208_s1 + $0x250] sm:$0xff]  ;;  %334 = vst.msk [vmem:[%s1209_s2 + $0x230] sm:$0xff] %vm263_vm0, %v249_v22 }
  0x3b   :  { %335 = vst.msk [vmem:[%s1209_s2 + $0x238] sm:$0xff] %vm263_vm0, %v250_v23  ;;  %v252_v31 = vadd.f32 %v168_v28, %v84_v26  ;;  %v253_v32 = vadd.f32 %v169_v30, %v85_v29  ;;  %v86_v33 = vld [vmem:[%s1207_s0 + $0x258] sm:$0xff]  ;;  %v87_v35 = vld [vmem:[%s1207_s0 + $0x260] sm:$0xff]  ;;  %v88_v38 = vld [vmem:[%s1207_s0 + $0x268] sm:$0xff] }
  0x3c   :  { %v170_v34 = vld [vmem:[%s1208_s1 + $0x258] sm:$0xff]  ;;  %336 = vst.msk [vmem:[%s1209_s2 + $0x240] sm:$0xff] %vm263_vm0, %v251_v27  ;;  %v171_v37 = vld [vmem:[%s1208_s1 + $0x260] sm:$0xff]  ;;  %v172_v39 = vld [vmem:[%s1208_s1 + $0x268] sm:$0xff] }
  0x3d   :  { %v254_v36 = vadd.f32 %v170_v34, %v86_v33  ;;  %337 = vst.msk [vmem:[%s1209_s2 + $0x248] sm:$0xff] %vm263_vm0, %v252_v31  ;;  %338 = vst.msk [vmem:[%s1209_s2 + $0x250] sm:$0xff] %vm263_vm0, %v253_v32  ;;  %v255_v40 = vadd.f32 %v171_v37, %v87_v35  ;;  %v256_v41 = vadd.f32 %v172_v39, %v88_v38  ;;  %v89_v42 = vld [vmem:[%s1207_s0 + $0x270] sm:$0xff]  ;;  %v90_v44 = vld [vmem:[%s1207_s0 + $0x278] sm:$0xff] }
  0x3e   :  { %v173_v43 = vld [vmem:[%s1208_s1 + $0x270] sm:$0xff]  ;;  %v174_v46 = vld [vmem:[%s1208_s1 + $0x278] sm:$0xff]  ;;  %v91_v47 = vld [vmem:[%s1207_s0 + $0x280] sm:$0xff] }
  0x3f   :  { %339 = vst.msk [vmem:[%s1209_s2 + $0x258] sm:$0xff] %vm263_vm0, %v254_v36  ;;  %v257_v45 = vadd.f32 %v173_v43, %v89_v42  ;;  %v175_v48 = vld [vmem:[%s1208_s1 + $0x280] sm:$0xff]  ;;  %340 = vst.msk [vmem:[%s1209_s2 + $0x260] sm:$0xff] %vm263_vm0, %v255_v40  ;;  %v258_v49 = vadd.f32 %v174_v46, %v90_v44  ;;  %v92_v51 = vld [vmem:[%s1207_s0 + $0x288] sm:$0xff] }
  0x40   :  { %341 = vst.msk [vmem:[%s1209_s2 + $0x268] sm:$0xff] %vm263_vm0, %v256_v41  ;;  %v259_v50 = vadd.f32 %v175_v48, %v91_v47  ;;  %v176_v52 = vld [vmem:[%s1208_s1 + $0x288] sm:$0xff]  ;;  %v93_v53 = vld [vmem:[%s1207_s0 + $0x290] sm:$0xff]  ;;  %v94_v56 = vld [vmem:[%s1207_s0 + $0x298] sm:$0xff] }
  0x41   :  { %342 = vst.msk [vmem:[%s1209_s2 + $0x270] sm:$0xff] %vm263_vm0, %v257_v45  ;;  %v260_v54 = vadd.f32 %v176_v52, %v92_v51  ;;  %v177_v55 = vld [vmem:[%s1208_s1 + $0x290] sm:$0xff]  ;;  %v178_v57 = vld [vmem:[%s1208_s1 + $0x298] sm:$0xff]  ;;  %343 = vst.msk [vmem:[%s1209_s2 + $0x278] sm:$0xff] %vm263_vm0, %v258_v49 }
  0x42   :  { %344 = vst.msk [vmem:[%s1209_s2 + $0x280] sm:$0xff] %vm263_vm0, %v259_v50  ;;  %v261_v58 = vadd.f32 %v177_v55, %v93_v53  ;;  %v262_v59 = vadd.f32 %v178_v57, %v94_v56 }
  0x43   :  { %345 = vst.msk [vmem:[%s1209_s2 + $0x288] sm:$0xff] %vm263_vm0, %v260_v54 }
  0x44   :  { %346 = vst.msk [vmem:[%s1209_s2 + $0x290] sm:$0xff] %vm263_vm0, %v261_v58  ;;  %347 = vst.msk [vmem:[%s1209_s2 + $0x298] sm:$0xff] %vm263_vm0, %v262_v59 }

</bundles_post_ra>
